<compile_context>
chip_gen: v5e
topology: v5e:2x2
jax: 0.10.0
libtpu: 0.0.40
codegen_flags: <defaults>
</compile_context>

<pallas_src>
import jax
import jax.numpy as jnp
from jax.experimental import pallas as pl
from jax.experimental.pallas import tpu as pltpu

IGNORE_INDEX = -100
EPS = 1e-8


def _nll_kernel(x_ref, t_ref, sum_ref, cnt_ref, sum_acc, cnt_acc):
    # x_ref: [1, C, T] f32 probabilities ; t_ref: [1, 1, T] i32 targets
    b = pl.program_id(0)
    j = pl.program_id(1)
    is_first = jnp.logical_and(b == 0, j == 0)
    is_last = jnp.logical_and(
        b == pl.num_programs(0) - 1, j == pl.num_programs(1) - 1
    )

    @pl.when(is_first)
    def _():
        sum_acc[...] = jnp.zeros_like(sum_acc)
        cnt_acc[...] = jnp.zeros_like(cnt_acc)

    x = x_ref[0]                                   # [C, T]  (C on sublanes, T on lanes)
    t = t_ref[0]                                   # [1, T]

    class_ids = jax.lax.broadcasted_iota(jnp.int32, x.shape, 0)   # [C, T]
    onehot = class_ids == t                                       # broadcast over C sublanes

    # Select the target-class probability first (VPU + small sublane reduce),
    # then take the log of only the picked row (EUP work is C-fold smaller).
    picked = jnp.sum(jnp.where(onehot, x, 0.0), axis=0, keepdims=True)   # [1, T]

    valid = t != IGNORE_INDEX                                            # [1, T]
    # EPS inside the log: ignored / padded lanes have picked == 0 -> log(EPS)
    # is finite and then masked out, so no NaN/Inf ever enters the sum.
    loss = jnp.where(valid, -jnp.log(picked + EPS), 0.0)                 # [1, T]

    # Lane-dense per-step accumulation (pure VPU; no cross-lane reduce here).
    sum_acc[...] = sum_acc[...] + loss
    cnt_acc[...] = cnt_acc[...] + valid.astype(jnp.int32)

    @pl.when(is_last)
    def _():
        sum_ref[...] = jnp.sum(sum_acc[...], keepdims=True)   # (1, 1) f32
        cnt_ref[...] = jnp.sum(cnt_acc[...], keepdims=True)   # (1, 1) i32


def nll_loss(inputs: jax.Array, target: jax.Array, *, tile_hw: int = 2048) -> jax.Array:
    """inputs: [B, C, H, W] f32 probabilities; target: [B, H, W] int labels."""
    B, C, H, W = inputs.shape
    HW = H * W

    # Free reshapes only (no transpose, no extra HBM pass).
    x = inputs.reshape(B, C, HW).astype(jnp.float32)
    t = target.reshape(B, 1, HW).astype(jnp.int32)

    # Lane-aligned tile along the spatial axis.
    tile = min(tile_hw, pl.cdiv(HW, 128) * 128)
    HW_pad = pl.cdiv(HW, tile) * tile
    if HW_pad != HW:
        # Padded lanes: prob 0 (finite after +EPS in log) and ignore_index target,
        # so they contribute to neither the sum nor the count.
        x = jnp.pad(x, ((0, 0), (0, 0), (0, HW_pad - HW)))
        t = jnp.pad(t, ((0, 0), (0, 0), (0, HW_pad - HW)),
                    constant_values=IGNORE_INDEX)

    grid = (B, HW_pad // tile)

    loss_sum, loss_cnt = pl.pallas_call(
        _nll_kernel,
        out_shape=(
            jax.ShapeDtypeStruct((1, 1), jnp.float32),
            jax.ShapeDtypeStruct((1, 1), jnp.int32),
        ),
        grid_spec=pltpu.PrefetchScalarGridSpec(
            num_scalar_prefetch=0,
            grid=grid,
            in_specs=[
                pl.BlockSpec((1, C, tile), lambda b, j: (b, 0, j)),
                pl.BlockSpec((1, 1, tile), lambda b, j: (b, 0, j)),
            ],
            out_specs=[
                pl.BlockSpec((1, 1), lambda b, j: (0, 0)),
                pl.BlockSpec((1, 1), lambda b, j: (0, 0)),
            ],
            scratch_shapes=[
                pltpu.VMEM((1, tile), jnp.float32),   # per-lane loss partials
                pltpu.VMEM((1, tile), jnp.int32),     # per-lane valid counts
            ],
        ),
        compiler_params=pltpu.CompilerParams(
            dimension_semantics=("arbitrary", "arbitrary"),
        ),
    )(x, t)

    # mean reduction: divide by the number of non-ignored elements
    return (loss_sum[0, 0] / loss_cnt[0, 0].astype(jnp.float32)).astype(jnp.float32)


def _nll_loss_ref(inputs, target):
    # pure-JAX reference for correctness check
    B, C, H, W = inputs.shape
    x = jnp.transpose(inputs, (0, 2, 3, 1)).reshape(-1, C)
    t = target.reshape(-1)
    valid = t != IGNORE_INDEX
    safe_t = jnp.where(valid, t, 0)
    logp = jnp.log(x + EPS)
    picked = jnp.take_along_axis(logp, safe_t[:, None], axis=1)[:, 0]
    loss = jnp.where(valid, -picked, 0.0)
    return jnp.sum(loss) / jnp.sum(valid.astype(jnp.float32))


if __name__ == "__main__":
    key = jax.random.PRNGKey(0)
    B, C, H, W = 2, 4, 16, 16

    k1, k2, k3 = jax.random.split(key, 3)
    logits = jax.random.normal(k1, (B, C, H, W), dtype=jnp.float32)
    probs = jax.nn.softmax(logits, axis=1)  # probability vector over C
    target = jax.random.randint(k2, (B, H, W), 0, C, dtype=jnp.int32)
    # sprinkle some ignore_index positions to exercise masking
    ignore_mask = jax.random.bernoulli(k3, 0.1, (B, H, W))
    target = jnp.where(ignore_mask, IGNORE_INDEX, target)

    loss = nll_loss(probs, target)
    jax.block_until_ready(loss)

    ref = _nll_loss_ref(probs, target)
    assert jnp.allclose(loss, ref, atol=1e-5, rtol=1e-5), (loss, ref)

    print("KERNEL_OK")
</pallas_src>

<mosaic_0001>
module attributes {stable_mosaic.version = 11 : i64} {
  func.func @_nll_kernel(%arg0: i32, %arg1: i32, %arg2: memref<1x4x256xf32, #tpu.memory_space<vmem>>, %arg3: memref<1x1x256xi32, #tpu.memory_space<vmem>>, %arg4: memref<1x1xf32, #tpu.memory_space<vmem>>, %arg5: memref<1x1xi32, #tpu.memory_space<vmem>>, %arg6: memref<1x256xf32, #tpu.memory_space<vmem>>, %arg7: memref<1x256xi32, #tpu.memory_space<vmem>>) attributes {dimension_semantics = [#tpu.dimension_semantics<arbitrary>, #tpu.dimension_semantics<arbitrary>], iteration_bounds = array<i64: 2, 1>, scalar_prefetch = 0 : i64, scratch_operands = 2 : i64, tpu.core_type = #tpu.core_type<tc>, window_params = [{transform_indices = @transform_0, window_bounds = array<i64: 1, 4, 256>}, {transform_indices = @transform_1, window_bounds = array<i64: 1, 1, 256>}, {pipeline_mode = #tpu.pipeline_mode<synchronous>, transform_indices = @transform_2, window_bounds = array<i64: 1, 1>}, {pipeline_mode = #tpu.pipeline_mode<synchronous>, transform_indices = @transform_3, window_bounds = array<i64: 1, 1>}]} {
    %c0_i32 = arith.constant 0 : i32
    %0 = arith.cmpi eq, %arg0, %c0_i32 : i32
    %c0_i32_0 = arith.constant 0 : i32
    %1 = arith.cmpi eq, %arg1, %c0_i32_0 : i32
    %2 = arith.andi %0, %1 : i1
    %c1_i32 = arith.constant 1 : i32
    %3 = arith.cmpi eq, %arg0, %c1_i32 : i32
    %c0_i32_1 = arith.constant 0 : i32
    %4 = arith.cmpi eq, %arg1, %c0_i32_1 : i32
    %5 = arith.andi %3, %4 : i1
    %6 = arith.extui %2 : i1 to i32
    %c0_i32_2 = arith.constant 0 : i32
    %7 = arith.cmpi ne, %6, %c0_i32_2 : i32
    scf.if %7 {
      %cst_21 = arith.constant 0.000000e+00 : f32
      %37 = vector.broadcast %cst_21 : f32 to vector<1x256xf32>
      %c0_22 = arith.constant 0 : index
      %c0_23 = arith.constant 0 : index
      %38 = vector.load %arg6[%c0_22, %c0_23] : memref<1x256xf32, #tpu.memory_space<vmem>>, vector<1x256xf32>
      tpu.vector_store %arg6[%c0_22, %c0_23], %37 {strides = array<i32>} : memref<1x256xf32, #tpu.memory_space<vmem>>, vector<1x256xf32>,
      %c0_i32_24 = arith.constant 0 : i32
      %39 = vector.broadcast %c0_i32_24 : i32 to vector<1x256xi32>
      %c0_25 = arith.constant 0 : index
      %c0_26 = arith.constant 0 : index
      %40 = vector.load %arg7[%c0_25, %c0_26] : memref<1x256xi32, #tpu.memory_space<vmem>>, vector<1x256xi32>
      tpu.vector_store %arg7[%c0_25, %c0_26], %39 {strides = array<i32>} : memref<1x256xi32, #tpu.memory_space<vmem>>, vector<1x256xi32>,
    } else {
    }
    %c0 = arith.constant 0 : index
    %c0_3 = arith.constant 0 : index
    %c0_4 = arith.constant 0 : index
    %8 = vector.load %arg2[%c0, %c0_3, %c0_4] : memref<1x4x256xf32, #tpu.memory_space<vmem>>, vector<1x4x256xf32>
    %9 = vector.shape_cast %8 : vector<1x4x256xf32> to vector<4x256xf32>
    %c0_5 = arith.constant 0 : index
    %c0_6 = arith.constant 0 : index
    %c0_7 = arith.constant 0 : index
    %10 = vector.load %arg3[%c0_5, %c0_6, %c0_7] : memref<1x1x256xi32, #tpu.memory_space<vmem>>, vector<1x1x256xi32>
    %11 = vector.shape_cast %10 : vector<1x1x256xi32> to vector<1x256xi32>
    %12 = tpu.iota {dimensions = array<i32: 0>} : vector<4x256xi32>
    %13 = vector.broadcast %11 : vector<1x256xi32> to vector<4x256xi32>
    %14 = arith.cmpi eq, %12, %13 : vector<4x256xi32>
    %cst = arith.constant 0.000000e+00 : f32
    %15 = vector.broadcast %cst : f32 to vector<4x256xf32>
    %16 = arith.select %14, %9, %15 : vector<4x256xi1>, vector<4x256xf32>
    %cst_8 = arith.constant dense<0.000000e+00> : vector<256xf32>
    %17 = vector.multi_reduction <add>, %16, %cst_8 [0] : vector<4x256xf32> to vector<256xf32>
    %18 = vector.shape_cast %17 : vector<256xf32> to vector<1x256xf32>
    %c-100_i32 = arith.constant -100 : i32
    %19 = vector.broadcast %c-100_i32 : i32 to vector<1x256xi32>
    %20 = arith.cmpi ne, %11, %19 : vector<1x256xi32>
    %cst_9 = arith.constant 9.99999993E-9 : f32
    %21 = vector.broadcast %cst_9 : f32 to vector<1x256xf32>
    %22 = arith.addf %18, %21 : vector<1x256xf32>
    %23 = math.log %22 : vector<1x256xf32>
    %cst_10 = arith.constant 0.000000e+00 : f32
    %24 = vector.broadcast %cst_10 : f32 to vector<1x256xf32>
    %25 = arith.subf %24, %23 : vector<1x256xf32>
    %cst_11 = arith.constant 0.000000e+00 : f32
    %26 = vector.broadcast %cst_11 : f32 to vector<1x256xf32>
    %27 = arith.select %20, %25, %26 : vector<1x256xi1>, vector<1x256xf32>
    %c0_12 = arith.constant 0 : index
    %c0_13 = arith.constant 0 : index
    %28 = vector.load %arg6[%c0_12, %c0_13] : memref<1x256xf32, #tpu.memory_space<vmem>>, vector<1x256xf32>
    %29 = arith.addf %28, %27 : vector<1x256xf32>
    %c0_14 = arith.constant 0 : index
    %c0_15 = arith.constant 0 : index
    %30 = vector.load %arg6[%c0_14, %c0_15] : memref<1x256xf32, #tpu.memory_space<vmem>>, vector<1x256xf32>
    tpu.vector_store %arg6[%c0_14, %c0_15], %29 {strides = array<i32>} : memref<1x256xf32, #tpu.memory_space<vmem>>, vector<1x256xf32>,
    %c0_16 = arith.constant 0 : index
    %c0_17 = arith.constant 0 : index
    %31 = vector.load %arg7[%c0_16, %c0_17] : memref<1x256xi32, #tpu.memory_space<vmem>>, vector<1x256xi32>
    %32 = arith.extui %20 : vector<1x256xi1> to vector<1x256xi32>
    %33 = arith.addi %31, %32 : vector<1x256xi32>
    %c0_18 = arith.constant 0 : index
    %c0_19 = arith.constant 0 : index
    %34 = vector.load %arg7[%c0_18, %c0_19] : memref<1x256xi32, #tpu.memory_space<vmem>>, vector<1x256xi32>
    tpu.vector_store %arg7[%c0_18, %c0_19], %33 {strides = array<i32>} : memref<1x256xi32, #tpu.memory_space<vmem>>, vector<1x256xi32>,
    %35 = arith.extui %5 : i1 to i32
    %c0_i32_20 = arith.constant 0 : i32
    %36 = arith.cmpi ne, %35, %c0_i32_20 : i32
    scf.if %36 {
      %c0_21 = arith.constant 0 : index
      %c0_22 = arith.constant 0 : index
      %37 = vector.load %arg6[%c0_21, %c0_22] : memref<1x256xf32, #tpu.memory_space<vmem>>, vector<1x256xf32>
      %38 = vector.shape_cast %37 : vector<1x256xf32> to vector<1x1x256xf32>
      %cst_23 = arith.constant dense<0.000000e+00> : vector<1xf32>
      %39 = vector.multi_reduction <add>, %38, %cst_23 [1, 2] : vector<1x1x256xf32> to vector<1xf32>
      %40 = vector.shape_cast %39 : vector<1xf32> to vector<1x1x1xf32>
      %41 = vector.extract %40[0, 0, 0] : f32 from vector<1x1x1xf32>
      %42 = vector.broadcast %41 : f32 to vector<1x1xf32>
      %c0_24 = arith.constant 0 : index
      %c0_25 = arith.constant 0 : index
      %43 = vector.load %arg4[%c0_24, %c0_25] : memref<1x1xf32, #tpu.memory_space<vmem>>, vector<1x1xf32>
      tpu.vector_store %arg4[%c0_24, %c0_25], %42 {strides = array<i32>} : memref<1x1xf32, #tpu.memory_space<vmem>>, vector<1x1xf32>,
      %c0_26 = arith.constant 0 : index
      %c0_27 = arith.constant 0 : index
      %44 = vector.load %arg7[%c0_26, %c0_27] : memref<1x256xi32, #tpu.memory_space<vmem>>, vector<1x256xi32>
      %45 = vector.shape_cast %44 : vector<1x256xi32> to vector<1x1x256xi32>
      %cst_28 = arith.constant dense<0> : vector<1xi32>
      %46 = vector.multi_reduction <add>, %45, %cst_28 [1, 2] : vector<1x1x256xi32> to vector<1xi32>
      %47 = vector.shape_cast %46 : vector<1xi32> to vector<1x1x1xi32>
      %48 = vector.extract %47[0, 0, 0] : i32 from vector<1x1x1xi32>
      %49 = vector.broadcast %48 : i32 to vector<1x1xi32>
      %c0_29 = arith.constant 0 : index
      %c0_30 = arith.constant 0 : index
      %50 = vector.load %arg5[%c0_29, %c0_30] : memref<1x1xi32, #tpu.memory_space<vmem>>, vector<1x1xi32>
      tpu.vector_store %arg5[%c0_29, %c0_30], %49 {strides = array<i32>} : memref<1x1xi32, #tpu.memory_space<vmem>>, vector<1x1xi32>,
    } else {
    }
    return
  }
  func.func @transform_0(%arg0: i32, %arg1: i32) -> (i32, i32, i32) {
    %c0_i32 = arith.constant 0 : i32
    %c0_i32_0 = arith.constant 0 : i32
    return %arg0, %c0_i32, %arg1 : i32, i32, i32
  }
  func.func @transform_1(%arg0: i32, %arg1: i32) -> (i32, i32, i32) {
    %c0_i32 = arith.constant 0 : i32
    %c0_i32_0 = arith.constant 0 : i32
    return %arg0, %c0_i32, %arg1 : i32, i32, i32
  }
  func.func @transform_2(%arg0: i32, %arg1: i32) -> (i32, i32) {
    %c0_i32 = arith.constant 0 : i32
    %c0_i32_0 = arith.constant 0 : i32
    %c0_i32_1 = arith.constant 0 : i32
    return %c0_i32, %c0_i32_0 : i32, i32
  }
  func.func @transform_3(%arg0: i32, %arg1: i32) -> (i32, i32) {
    %c0_i32 = arith.constant 0 : i32
    %c0_i32_0 = arith.constant 0 : i32
    %c0_i32_1 = arith.constant 0 : i32
    return %c0_i32, %c0_i32_0 : i32, i32
  }
}

</mosaic_0001>

<bundles_post_ra>
// kernel: tpu_custom_call.1
= control target key start
LH: loop header
LB: loop body
LE: loop exit
PB: predicated region body
PF: predicated region fallthrough
CT: control target
= control target key end

     0   :  { %9 = vsyncpa [#allocation5], 0  ;;  %s936_s0 = inlined_call_operand.hbm [shape: f32[2,4,256], index: 0, kind: input, shape index: {}]   ;;  %s937_s1 = inlined_call_operand.hbm [shape: s32[2,1,256], index: 1, kind: input, shape index: {}]   ;;  %s938_s2 = inlined_call_operand.hbm [shape: f32[1,1], index: 2, kind: output, shape index: {0}]   ;;  %s939_s3 = inlined_call_operand.hbm [shape: s32[1,1], index: 3, kind: output, shape index: {1}]  }
   0x1   :  { %11 = vsyncpa [#allocation5 + $0x1], 0 }
   0x2   :  { %12 = vsyncpa [#allocation8], 0 }
   0x3   :  { %14 = vsyncpa [#allocation8 + $0x1], 0 }
   0x4   :  { %15 = vsyncpa [#allocation6], 0 }
   0x5   :  { %16 = vsyncpa [#allocation11], 0  ;;  %s792_s12 = smov 0   ;;  %s794_s13 = smov 0  }
   0x6   :  { %s796_s14 = smov 0   ;;  %s798_s15 = smov 0  }
   0x7   :  { %s800_s16 = smov 0   ;;  %s802_s17 = smov 0  }
   0x8 LB: > { %s480_s18 = sadd.s32 4294967295, %s765_s17   ;;  %s34_s19 = sadd.s32 1, %s761_s16  ;;  %s765_s17 = sphi %s802_s17, %s22_s17   ;;  %s761_s16 = sphi %s800_s16, %s950_s16   ;;  %s757_s15 = sphi %s798_s15, %s949_s15   ;;  %s753_s14 = sphi %s796_s14, %s948_s14   ;;  %s749_s13 = sphi %s794_s13, %s947_s13   ;;  %s745_s12 = sphi %s792_s12, %s946_s12  }
   0x9   : > { %p36_p0 = scmp.ge.s32.totalorder %s34_s19, 2  ;;  %s43_s20 = sadd.s32 1, %s753_s14 }
   0xa   : > { %p50_p1 = scmp.ne.s32.totalorder %s753_s14, %s749_s13  ;;  %p51_p2 = scmp.eq.s32.totalorder %s765_s17, 0 }
   0xb   : > { %s952_s19 = smov (%p36_p0, %s34_s19), 0  ;;  %p56_p4 = scmp.ne.s32.totalorder %s749_s13, %s745_s12 }
   0xc   : > { %p828_p3 = por %p51_p2, %p50_p1  ;;  %s38_s22 = ssub.s32 %s761_s16, %s952_s19 }
   0xd   : > { %p57_p5 = scmp.eq.s32.totalorder %s480_s18, 0  ;;  %p41_p6 = scmp.eq.s32.totalorder %s38_s22, 0 }
   0xe   : > { %p525_p8 = scmp.lt.s32.totalorder %s765_s17, 2  ;;  %s150_s25 = sand.u32 1, %s753_s14  }
   0xf   : > { %p837_p7 = por %p57_p5, %p56_p4  ;;  %s499_s26 = sshll.u32 %s761_s16, 3 }
  0x10   : > { %s843_s24 = scalar_select %p41_p6, %s753_s14, %s43_s20  }
  0x11   : > { %s483_s27 = sshll.u32 %s150_s25, 3  ;;  %s161_s30 = scalar_lea.hbm %s936_s0, %s499_s26 }
  0x12   : > { %s163_s4 = sshll.u32 %s161_s30, 4  ;;  %s154_s5 = scalar_lea.vmem [#allocation4], %s483_s27  ;;  %s164_s4 = int_to_ptr.hbm [resolvable:$true] %s163_s4 }
  0x13   : > { %s165_s6 = sshll.u32 %s154_s5, 4  ;;  %p852_p9 = pnand %p525_p8, %p828_p3  ;;  %s166_s6 = int_to_ptr.vmem [resolvable:$true] %s165_s6 }
  0x14   : > { %p488_p10 = scmp.ge.s32.totalorder %s765_s17, 1  ;;  %p191_p11 = scmp.lt.s32.totalorder %s765_s17, 3 }
  0x15   : > { %s486_s8 = sshll.u32 %s150_s25, 1  ;;  %s151_s9 = scalar_lea.sflag [#allocation5], %s150_s25 }
  0x16   : > { %521 = dma.hbm_to_vmem [thread:$0]  (!%p852_p9), %s164_s4, 128, %s166_s6, %s151_s9  }
  0x17   : > { %p192_p12 = pnand %p488_p10, %p191_p11  ;;  %s487_s10 = sshll.u32 %s761_s16, 1 }
  0x18   : > { %s176_s11 = scalar_lea.vmem [#allocation7], %s486_s8  ;;  %s182_s21 = scalar_lea.hbm %s937_s1, %s487_s10 }
  0x19   : > { %s186_s12 = sshll.u32 %s176_s11, 4  ;;  %s184_s26 = sshll.u32 %s182_s21, 4  ;;  %s187_s12 = int_to_ptr.vmem [resolvable:$true] %s186_s12  ;;  %s185_s26 = int_to_ptr.hbm [resolvable:$true] %s184_s26 }
  0x1a   : > { %s173_s27 = scalar_lea.sflag [#allocation8], %s150_s25  ;;  %195 = sbr.rel (%p192_p12) target bundleno = 289 (0x121), region = 28 }
  0x1b   : > { %524 = dma.hbm_to_vmem [thread:$0]  (!%p852_p9), %s185_s26, 32, %s187_s12, %s173_s27  }
  0x1c   : > { %s197_s28 = sand.u32 (!%p192_p12), 1, %s749_s13  }
  0x1d   : > { %s489_s29 = sshll.u32 (!%p192_p12), %s197_s28, 3  ;;  %s198_s30 = scalar_lea.sflag (!%p192_p12), [#allocation5], %s197_s28 }
  0x1e   : > { %s201_s4 = scalar_lea.vmem (!%p192_p12), [#allocation4], %s489_s29 }
  0x1f   : > { %728 = dma.done.wait (%p837_p7), %s198_s30, 128  }
  0x20   : > { %730 = vsyncadd (%p837_p7), %s198_s30, 4294967168  ;;  %s490_s5 = sshll.u32 %s197_s28, 1  ;;  %s208_s6 = scalar_lea.sflag [#allocation8], %s197_s28 }
  0x21   : > { %s211_s8 = scalar_lea.vmem [#allocation7], %s490_s5 }
  0x22   : > { %732 = dma.done.wait (%p837_p7), %s208_s6, 32  }
  0x23   : > { %734 = vsyncadd (%p837_p7), %s208_s6, 4294967264  ;;  %p237_p13 = scmp.eq.s32.totalorder %s757_s15, 0  ;;  %p241_p0 = scmp.eq.s32.totalorder %s757_s15, 1 }
  0x24   : > { %v246_v0 = vlaneseq (%p237_p13)  ;;  %v767_v1 = vmov (%p237_p13), 0.0   ;;  %v768_v2 = vmov (%p237_p13), 0  }
  0x25   : > { %245 = sbr.rel (!%p237_p13) target bundleno = 42 (0x2a), region = 40 }
  0x26   : > { %vm248_vm0 = vcmp.lt.s32.totalorder (%p237_p13), %v246_v0, 256 }
  0x27   : > { %250 = vst.msk [vmem:[#allocation2] sm:$0x3] (%p237_p13), %vm248_vm0, %v767_v1 }
  0x28   : > { %251 = vst.msk [vmem:[#allocation3] sm:$0x3] (%p237_p13), %vm248_vm0, %v768_v2 }
  0x2a PF: > { %v252_v3 = vld [vmem:[%s201_s4] sm:$0xff]  ;;  %v253_v4 = vld [vmem:[%s211_s8] sm:$0x3]  ;;  %v254_v5 = vlaneseq  ;;  %vm268_vm4 = vcmask 1043456   ;;  %v769_v13 = vmov 0   ;;  %vm295_vm6 = vcmask 1040384  }
  0x2b   : > { %261 = vst [vmem:[#allocation1] ss:$2 sm:$0xff] %v252_v3  ;;  %v256_v7 = vperm.slane %v253_v4, 0  ;;  %v257_v8 = vperm.slane %v253_v4, 1  ;;  %vm283_vm3 = vcmp.ne.s32.totalorder %v253_v4, 4294967196  ;;  %vm331_vm7 = vcmask (%p241_p0), 0  }
  0x2c   : > { %v255_v6 = vshrl.u32 %v254_v5, 7  ;;  %v307_v14 = vsel %vm283_vm3, 1, %v769_v13  ;;  %vm878_vm5 = vcmp.lt.s32.totalorder %v254_v5, 256 }
  0x2e   : > { %vm258_vm1 = vcmp.eq.s32.totalorder %v255_v6, %v256_v7  ;;  %vm259_vm2 = vcmp.eq.s32.totalorder %v255_v6, %v257_v8  ;;  %v299_v41 = vld [vmem:[#allocation2] sm:$0x3] }
  0x2f   : > { %v306_v18 = vld [vmem:[#allocation3] sm:$0x3] }
  0x30   : > { %v308_v21 = vadd.s32 %v307_v14, %v306_v18 }
  0x32   : > { %v262_v9 = vld.sshfl [vmem:[#allocation1] sm:$0xff pattern:$0x75316420]  ;;  %v263_v10 = vld.sshfl [vmem:[#allocation1 + $0x8] sm:$0xff pattern:$0x75316420] }
  0x33   : > { %v266_v11 = vsel %vm258_vm1, %v262_v9, 0.0  ;;  %v267_v12 = vsel %vm259_vm2, %v263_v10, 0.0  ;;  %309 = vst.msk [vmem:[#allocation3] sm:$0x3] %vm878_vm5, %v308_v21 }
  0x34   : > { %v269_v15 = vsel %vm268_vm4, %v266_v11, 0.0  ;;  %v276_v16 = vsel %vm268_vm4, %v267_v12, 0.0 }
  0x35   : > { %v270_v19 = vrot.slane %v269_v15, 4  ;;  %v277_v20 = vrot.slane %v276_v16, 4 }
  0x37   : > { %v271_v22 = vadd.f32 %v270_v19, %v269_v15  ;;  %v278_v23 = vadd.f32 %v277_v20, %v276_v16 }
  0x39   : > { %v272_v24 = vrot.slane %v271_v22, 2  ;;  %v279_v25 = vrot.slane %v278_v23, 2 }
  0x3a   : > { %v333_v45 = vld [vmem:[#allocation3] sm:$0x3] (%p241_p0) }
  0x3b   : > { %v273_v26 = vadd.f32 %v272_v24, %v271_v22  ;;  %v280_v27 = vadd.f32 %v279_v25, %v278_v23  ;;  %v334_v47 = vperm.slane (%p241_p0), %v333_v45, 0  ;;  %v335_v48 = vperm.slane (%p241_p0), %v333_v45, 1 }
  0x3d   : > { %v274_v28 = vrot.slane %v273_v26, 1  ;;  %v281_v29 = vrot.slane %v280_v27, 1  ;;  %v336_v51 = vsel (%p241_p0), %vm295_vm6, %v334_v47, 0  ;;  %v337_v52 = vsel (%p241_p0), %vm295_vm6, %v335_v48, 0 }
  0x3e   : > { %v338_v55 = vadd.s32 (%p241_p0), %v337_v52, %v336_v51 }
  0x3f   : > { %v275_v30 = vadd.f32 %v274_v28, %v273_v26  ;;  %v282_v31 = vadd.f32 %v281_v29, %v280_v27 }
  0x40   : > { %v340_v57 = vshrl.u32 (%p241_p0), %v338_v55, 16  ;;  %v339_v59 = vand.u32 (%p241_p0), 65535, %v338_v55 }
  0x41   : > { %v284_v32 = vadd.f32 1e-08, %v275_v30  ;;  %v285_v33 = vadd.f32 1e-08, %v282_v31 }
  0x42   : > { %v342_v58 = vcvt.s32.f32 (%p241_p0), %v340_v57  ;;  %v341_v60 = vcvt.s32.f32 (%p241_p0), %v339_v59 }
  0x43   : > { %583 = vlog2.f32 %v284_v32 }
  0x44   : > { %585 = vlog2.f32 %v285_v33  ;;  %345 = vadd.xlane.f32.xlu0 (%p241_p0), %v342_v58 }
  0x49   : > { %v584_v34 = vpop.eup %583 }
  0x4a   : > { %v586_v35 = vpop.eup %585  ;;  %v287_v36 = vmul.f32 0.6931472, %v584_v34 }
  0x4b   : > { %v289_v37 = vmul.f32 0.6931472, %v586_v35 }
  0x4c   : > { %v290_v39 = vsub.f32 0.0, %v287_v36  ;;  %343 = vadd.xlane.f32.xlu0 (%p241_p0), %v341_v60 }
  0x4d   : > { %v291_v38 = vsub.f32 0.0, %v289_v37 }
  0x4f   : > { %v294_v40 = vrot.slane %v291_v38, 7 }
  0x51   : > { %v296_v42 = vsel %vm295_vm6, %v290_v39, %v294_v40  ;;  %311 = sbr.rel (!%p241_p0) target bundleno = 279 (0x117), region = 44 }
  0x52   : > { %v298_v43 = vsel %vm283_vm3, %v296_v42, 0.0 }
  0x53   : > { %v300_v44 = vadd.f32 %v299_v41, %v298_v43 }
  0x55   : > { %305 = vst.msk [vmem:[#allocation2] sm:$0x3] %vm878_vm5, %v300_v44 }
  0x5c   : > { %v312_v46 = vld [vmem:[#allocation2] sm:$0x3] }
  0x5d   : > { %v314_v49 = vperm.slane %v312_v46, 0  ;;  %v315_v50 = vperm.slane %v312_v46, 1 }
  0x5f   : > { %v318_v53 = vsel %vm295_vm6, %v314_v49, 0.0  ;;  %v319_v54 = vsel %vm295_vm6, %v315_v50, 0.0 }
  0x60   : > { %v320_v56 = vadd.f32 %v319_v54, %v318_v53 }
  0x62   : > { %321 = vadd.xlane.f32.xlu1 %v320_v56 }
  0xb7   : > { %v346_v0 = vpop.xlane.xlu0 %345 }
  0xb8   : > { %v348_v3 = vcvt.f32.s32 %v346_v0 }
  0xba   : > { %v349_v7 = vshll.u32 %v348_v3, 16 }
  0xbf   : > { %v344_v6 = vpop.xlane.xlu0 %343 }
  0xc0   : > { %v347_v8 = vcvt.f32.s32 %v344_v6 }
  0xc2   : > { %v350_v9 = vadd.s32 %v349_v7, %v347_v8 }
  0xc4   : > { %v351_v10 = vrot.slane %v350_v9, 4 }
  0xc6   : > { %v352_v11 = vadd.s32 %v351_v10, %v350_v9 }
  0xc8   : > { %v353_v12 = vrot.slane %v352_v11, 2 }
  0xca   : > { %v354_v13 = vadd.s32 %v353_v12, %v352_v11 }
  0xcc   : > { %v355_v14 = vrot.slane %v354_v13, 1 }
  0xce   : > { %v356_v15 = vadd.s32 %v355_v14, %v354_v13 }
  0xd5   : > { %v322_v61 = vpop.xlane.xlu1 %321 }
  0xd6   : > { %v323_v62 = vrot.slane %v322_v61, 4 }
  0xd8   : > { %v324_v63 = vadd.f32 %v323_v62, %v322_v61 }
  0xda   : > { %v325_v1 = vrot.slane %v324_v63, 2 }
  0xdc   : > { %v326_v2 = vadd.f32 %v325_v1, %v324_v63 }
  0xde   : > { %v327_v4 = vrot.slane %v326_v2, 1 }
  0xe0   : > { %v328_v5 = vadd.f32 %v327_v4, %v326_v2 }
  0xe2   : > { %502 = vpush %v328_v5 }
  0xe3   : > { %504 = vpush %v356_v15 }
 0x113   : > { %s503_s15 = spop %502 }
 0x114   : > { %v330_v16 = vstv %s503_s15  ;;  %s505_s23 = spop %504 }
 0x115   : > { %332 = vst.msk [vmem:[#allocation9] sm:$0x1] %vm331_vm7, %v330_v16  ;;  %v358_v17 = vstv %s505_s23 }
 0x116   : > { %359 = vst.msk [vmem:[#allocation10] sm:$0x1] %vm331_vm7, %v358_v17 }
 0x117 PF: > { %p896_p1 = scmp.eq.s32.totalorder %s480_s18, 1  ;;  %s368_s10 = sshll.u32 %s938_s2, 4  ;;  %s369_s10 = int_to_ptr.hbm [resolvable:$true] %s368_s10 }
 0x118   : > { %s770_s11 = smov [#allocation9]   ;;  %s771_s20 = smov [#allocation10]  }
 0x119   : > { %s366_s12 = sshll.u32 %s770_s11, 4  ;;  %s378_s22 = sshll.u32 %s771_s20, 4  ;;  %s367_s12 = int_to_ptr.vmem [resolvable:$true] %s366_s12  ;;  %s379_s22 = int_to_ptr.vmem [resolvable:$true] %s378_s22 }
 0x11a   : > { %511 = dma.vmem_to_hbm [thread:$0]  (%p896_p1), %s367_s12, 16, %s369_s10, [#allocation6]  }
 0x11b   : > { %s380_s26 = sshll.u32 %s939_s3, 4  ;;  %s381_s26 = int_to_ptr.hbm [resolvable:$true] %s380_s26 }
 0x11c   : > { %513 = dma.vmem_to_hbm [thread:$0]  (%p896_p1), %s379_s22, 16, %s381_s26, [#allocation11]  }
 0x11d   : > { %736 = dma.done.wait (%p896_p1), [#allocation6], 16  }
 0x11e   : > { %738 = vsyncadd (%p896_p1), [#allocation6], 4294967280 }
 0x11f   : > { %740 = dma.done.wait (%p896_p1), [#allocation11], 16  }
 0x120   : > { %742 = vsyncadd (%p896_p1), [#allocation11], 4294967280 }
 0x121 PF: > { %s22_s17 = sadd.s32 1, %s765_s17   ;;  %s946_s12 = smov %s749_s13 }
 0x122   : > { %p19_p2 = scmp.ge.s32.totalorder %s22_s17, 4   ;;  %s947_s13 = smov %s753_s14 }
 0x123   : > { %s948_s14 = smov %s843_s24  ;;  %s949_s15 = smov %s761_s16 }
 0x124   : > { %s950_s16 = smov %s952_s19  ;;  %21 = sbr.rel (!%p19_p2) target bundleno = 8 (0x8), region = 94 }
 0x129   :  { %399 = vsyncpa [#allocation5], 1 }
 0x12a   :  { %401 = vsyncpa [#allocation5 + $0x1], 1 }
 0x12b   :  { %402 = vsyncpa [#allocation8], 1 }
 0x12c   :  { %404 = vsyncpa [#allocation8 + $0x1], 1 }
 0x12d   :  { %405 = vsyncpa [#allocation6], 1 }
 0x12e   :  { %407 = vsyncpa [#allocation6 + $0x1], 1 }
 0x12f   :  { %408 = vsyncpa [#allocation11], 1 }

</bundles_post_ra>
